<compile_context>
chip_gen: v7x
topology: tpu7x:2x2x1
jax: 0.10.0
libtpu: 0.0.40
codegen_flags: <defaults>
</compile_context>

<pallas_src>
import jax
import jax.numpy as jnp
from jax.experimental import pallas as pl
from jax.experimental.pallas import tpu as pltpu

LANE = 128
SUBLANE = 16          # use 16 (bf16 packing) so both bf16 x-tiles and f32 out-tiles are happy
MAX_TILE_B = 1024     # large batch tile to amortize ~0.35us per-grid-step overhead


def _round_up(n, m):
    return ((n + m - 1) // m) * m


def dqn_kernel(x_ref, w1_ref, b1_ref, w2_ref, b2_ref, w3_ref, b3_ref, o_ref):
    # Hoist bias reads once per grid step (f32, lane-dense (1, 128)).
    b1 = b1_ref[...]
    b2 = b2_ref[...]
    b3 = b3_ref[...]

    x = x_ref[...]                                                     # bf16 (TILE_B, state_dim)

    # fc1 + ReLU  (bf16 operands, f32 accumulate / epilogue)
    h1 = jnp.dot(x, w1_ref[...], preferred_element_type=jnp.float32)
    h1 = jnp.maximum(h1 + b1, 0.0)

    # fc2 + ReLU
    h2 = jnp.dot(h1.astype(jnp.bfloat16), w2_ref[...],
                 preferred_element_type=jnp.float32)
    h2 = jnp.maximum(h2 + b2, 0.0)

    # fc3 (no activation); lane-dense (TILE_B, 128) unmasked store
    o_ref[...] = jnp.dot(h2.astype(jnp.bfloat16), w3_ref[...],
                         preferred_element_type=jnp.float32) + b3


def dqn_forward(x, params, tile_b=MAX_TILE_B):
    """x: (B, state_dim) float32. params: dict of w1,b1,w2,b2,w3,b3 at natural sizes."""
    B, state_dim = x.shape
    hidden = params["w1"].shape[1]
    action_dim = params["w3"].shape[1]

    h_pad = _round_up(max(hidden, LANE), LANE)       # 64  -> 128
    a_pad = _round_up(max(action_dim, LANE), LANE)   # 4   -> 128

    # Batch tile: big (for pipelining / overhead amortization) but no bigger than needed.
    tile_b = min(_round_up(tile_b, SUBLANE), _round_up(max(B, 1), SUBLANE))
    grid_b = pl.cdiv(B, tile_b)
    b_total = grid_b * tile_b

    # --- operand preparation (bf16 matmul operands, zero-padded lane-dense layouts) ---
    xp = x.astype(jnp.bfloat16)
    if b_total != B:
        xp = jnp.pad(xp, ((0, b_total - B), (0, 0)))

    def pad_w(w, rows, cols):
        return jnp.pad(w, ((0, rows - w.shape[0]), (0, cols - w.shape[1]))).astype(jnp.bfloat16)

    def pad_b(b, cols):
        return jnp.pad(b, ((0, 0), (0, cols - b.shape[1]))).astype(jnp.float32)

    w1 = pad_w(params["w1"], state_dim, h_pad)   # (state_dim, 128) bf16
    b1 = pad_b(params["b1"], h_pad)              # (1, 128) f32
    w2 = pad_w(params["w2"], h_pad, h_pad)       # (128, 128) bf16
    b2 = pad_b(params["b2"], h_pad)              # (1, 128) f32
    w3 = pad_w(params["w3"], h_pad, a_pad)       # (128, 128) bf16
    b3 = pad_b(params["b3"], a_pad)              # (1, 128) f32

    flops = 2 * B * (state_dim * hidden + hidden * hidden + hidden * action_dim)
    bytes_accessed = (B * state_dim * 2 + B * a_pad * 4
                      + (state_dim * h_pad + h_pad * h_pad + h_pad * a_pad) * 2
                      + (3 * h_pad) * 4)

    out = pl.pallas_call(
        dqn_kernel,
        out_shape=jax.ShapeDtypeStruct((b_total, a_pad), jnp.float32),
        grid=(grid_b,),
        in_specs=[
            pl.BlockSpec((tile_b, state_dim), lambda i: (i, 0)),   # x: batch-tiled
            pl.BlockSpec((state_dim, h_pad), lambda i: (0, 0)),    # w1: VMEM-resident
            pl.BlockSpec((1, h_pad), lambda i: (0, 0)),            # b1
            pl.BlockSpec((h_pad, h_pad), lambda i: (0, 0)),        # w2
            pl.BlockSpec((1, h_pad), lambda i: (0, 0)),            # b2
            pl.BlockSpec((h_pad, a_pad), lambda i: (0, 0)),        # w3
            pl.BlockSpec((1, a_pad), lambda i: (0, 0)),            # b3
        ],
        out_specs=pl.BlockSpec((tile_b, a_pad), lambda i: (i, 0)),
        compiler_params=pltpu.CompilerParams(
            dimension_semantics=("parallel",),       # megacore sharding on v7x; harmless elsewhere
            vmem_limit_bytes=32 * 1024 * 1024,       # portable across v5e/v6e/v7x VMEM sizes
        ),
        cost_estimate=pl.CostEstimate(
            flops=flops, transcendentals=0, bytes_accessed=bytes_accessed),
    )(xp, w1, b1, w2, b2, w3, b3)

    return out[:B, :action_dim]


def init_dqn_params(key, state_dim, action_dim, hidden=64):
    """Deterministic init mimicking nn.Linear's U(-1/sqrt(fan_in), 1/sqrt(fan_in))."""
    ks = jax.random.split(key, 6)

    def lin(kw, kb, fan_in, fan_out):
        bound = 1.0 / jnp.sqrt(jnp.float32(fan_in))
        w = jax.random.uniform(kw, (fan_in, fan_out), jnp.float32, -bound, bound)
        b = jax.random.uniform(kb, (1, fan_out), jnp.float32, -bound, bound)
        return w, b

    w1, b1 = lin(ks[0], ks[1], state_dim, hidden)
    w2, b2 = lin(ks[2], ks[3], hidden, hidden)
    w3, b3 = lin(ks[4], ks[5], hidden, action_dim)
    return {"w1": w1, "b1": b1, "w2": w2, "b2": b2, "w3": w3, "b3": b3}


def dqn_ref_f32(x, p):
    """Pure-f32 JAX reference of the forward pass."""
    h1 = jnp.maximum(x @ p["w1"] + p["b1"], 0.0)
    h2 = jnp.maximum(h1 @ p["w2"] + p["b2"], 0.0)
    return h2 @ p["w3"] + p["b3"]


def dqn_ref_bf16(x, p):
    """Reference matching the kernel's numerics (bf16 matmul operands, f32 accumulate)."""
    xb = x.astype(jnp.bfloat16)
    h1 = jnp.dot(xb, p["w1"].astype(jnp.bfloat16), preferred_element_type=jnp.float32)
    h1 = jnp.maximum(h1 + p["b1"], 0.0)
    h2 = jnp.dot(h1.astype(jnp.bfloat16), p["w2"].astype(jnp.bfloat16),
                 preferred_element_type=jnp.float32)
    h2 = jnp.maximum(h2 + p["b2"], 0.0)
    return jnp.dot(h2.astype(jnp.bfloat16), p["w3"].astype(jnp.bfloat16),
                   preferred_element_type=jnp.float32) + p["b3"]


if __name__ == "__main__":
    key = jax.random.PRNGKey(0)
    k_x, k_p = jax.random.split(key)

    batch, state_dim, action_dim = 2, 16, 4
    x = jax.random.normal(k_x, (batch, state_dim), jnp.float32)
    params = init_dqn_params(k_p, state_dim, action_dim)

    out = dqn_forward(x, params)
    out = jax.block_until_ready(out)

    assert out.shape == (batch, action_dim)
    # Tight check against the numerics-matched (bf16 operand) reference.
    ref_bf16 = dqn_ref_bf16(x, params)
    assert jnp.allclose(out, ref_bf16, atol=1e-3, rtol=1e-3)
    # Sanity check against the pure-f32 reference (bf16 quantization tolerance).
    ref_f32 = dqn_ref_f32(x, params)
    assert jnp.allclose(out, ref_f32, atol=5e-2, rtol=5e-2)

    print("KERNEL_OK")
</pallas_src>

<mosaic_0001>
module attributes {stable_mosaic.version = 11 : i64} {
  func.func @dqn_kernel(%arg0: i32, %arg1: memref<16x16xbf16, #tpu.memory_space<vmem>>, %arg2: memref<16x128xbf16, #tpu.memory_space<vmem>>, %arg3: memref<1x128xf32, #tpu.memory_space<vmem>>, %arg4: memref<128x128xbf16, #tpu.memory_space<vmem>>, %arg5: memref<1x128xf32, #tpu.memory_space<vmem>>, %arg6: memref<128x128xbf16, #tpu.memory_space<vmem>>, %arg7: memref<1x128xf32, #tpu.memory_space<vmem>>, %arg8: memref<16x128xf32, #tpu.memory_space<vmem>>) attributes {dimension_semantics = [#tpu.dimension_semantics<parallel>], iteration_bounds = array<i64: 1>, scalar_prefetch = 0 : i64, scratch_operands = 0 : i64, tpu.core_type = #tpu.core_type<tc>, window_params = [{transform_indices = @transform_0, window_bounds = array<i64: 16, 16>}, {pipeline_mode = #tpu.pipeline_mode<synchronous>, transform_indices = @transform_1, window_bounds = array<i64: 16, 128>}, {pipeline_mode = #tpu.pipeline_mode<synchronous>, transform_indices = @transform_2, window_bounds = array<i64: 1, 128>}, {pipeline_mode = #tpu.pipeline_mode<synchronous>, transform_indices = @transform_3, window_bounds = array<i64: 128, 128>}, {pipeline_mode = #tpu.pipeline_mode<synchronous>, transform_indices = @transform_4, window_bounds = array<i64: 1, 128>}, {pipeline_mode = #tpu.pipeline_mode<synchronous>, transform_indices = @transform_5, window_bounds = array<i64: 128, 128>}, {pipeline_mode = #tpu.pipeline_mode<synchronous>, transform_indices = @transform_6, window_bounds = array<i64: 1, 128>}, {transform_indices = @transform_7, window_bounds = array<i64: 16, 128>}]} {
    %c0 = arith.constant 0 : index
    %c0_0 = arith.constant 0 : index
    %0 = vector.load %arg3[%c0, %c0_0] : memref<1x128xf32, #tpu.memory_space<vmem>>, vector<1x128xf32>
    %c0_1 = arith.constant 0 : index
    %c0_2 = arith.constant 0 : index
    %1 = vector.load %arg5[%c0_1, %c0_2] : memref<1x128xf32, #tpu.memory_space<vmem>>, vector<1x128xf32>
    %c0_3 = arith.constant 0 : index
    %c0_4 = arith.constant 0 : index
    %2 = vector.load %arg7[%c0_3, %c0_4] : memref<1x128xf32, #tpu.memory_space<vmem>>, vector<1x128xf32>
    %c0_5 = arith.constant 0 : index
    %c0_6 = arith.constant 0 : index
    %3 = vector.load %arg1[%c0_5, %c0_6] : memref<16x16xbf16, #tpu.memory_space<vmem>>, vector<16x16xbf16>
    %c0_7 = arith.constant 0 : index
    %c0_8 = arith.constant 0 : index
    %4 = vector.load %arg2[%c0_7, %c0_8] : memref<16x128xbf16, #tpu.memory_space<vmem>>, vector<16x128xbf16>
    %cst = arith.constant dense<0.000000e+00> : vector<16x128xf32>
    %5 = tpu.matmul %3, %4, %cst {dimension_numbers = #tpu.dot_dimension_numbers<[1], [0], [0], [1], [0, 0, 1, 1], [], []>} : vector<16x16xbf16>, vector<16x128xbf16>, vector<16x128xf32> -> vector<16x128xf32>
    %6 = vector.broadcast %0 : vector<1x128xf32> to vector<16x128xf32>
    %7 = arith.addf %5, %6 : vector<16x128xf32>
    %cst_9 = arith.constant 0.000000e+00 : f32
    %8 = vector.broadcast %cst_9 : f32 to vector<16x128xf32>
    %9 = arith.maximumf %7, %8 : vector<16x128xf32>
    %10 = arith.truncf %9 : vector<16x128xf32> to vector<16x128xbf16>
    %c0_10 = arith.constant 0 : index
    %c0_11 = arith.constant 0 : index
    %11 = vector.load %arg4[%c0_10, %c0_11] : memref<128x128xbf16, #tpu.memory_space<vmem>>, vector<128x128xbf16>
    %cst_12 = arith.constant dense<0.000000e+00> : vector<16x128xf32>
    %12 = tpu.matmul %10, %11, %cst_12 {dimension_numbers = #tpu.dot_dimension_numbers<[1], [0], [0], [1], [0, 0, 1, 1], [], []>} : vector<16x128xbf16>, vector<128x128xbf16>, vector<16x128xf32> -> vector<16x128xf32>
    %13 = vector.broadcast %1 : vector<1x128xf32> to vector<16x128xf32>
    %14 = arith.addf %12, %13 : vector<16x128xf32>
    %cst_13 = arith.constant 0.000000e+00 : f32
    %15 = vector.broadcast %cst_13 : f32 to vector<16x128xf32>
    %16 = arith.maximumf %14, %15 : vector<16x128xf32>
    %17 = arith.truncf %16 : vector<16x128xf32> to vector<16x128xbf16>
    %c0_14 = arith.constant 0 : index
    %c0_15 = arith.constant 0 : index
    %18 = vector.load %arg6[%c0_14, %c0_15] : memref<128x128xbf16, #tpu.memory_space<vmem>>, vector<128x128xbf16>
    %cst_16 = arith.constant dense<0.000000e+00> : vector<16x128xf32>
    %19 = tpu.matmul %17, %18, %cst_16 {dimension_numbers = #tpu.dot_dimension_numbers<[1], [0], [0], [1], [0, 0, 1, 1], [], []>} : vector<16x128xbf16>, vector<128x128xbf16>, vector<16x128xf32> -> vector<16x128xf32>
    %20 = vector.broadcast %2 : vector<1x128xf32> to vector<16x128xf32>
    %21 = arith.addf %19, %20 : vector<16x128xf32>
    %c0_17 = arith.constant 0 : index
    %c0_18 = arith.constant 0 : index
    %22 = vector.load %arg8[%c0_17, %c0_18] : memref<16x128xf32, #tpu.memory_space<vmem>>, vector<16x128xf32>
    tpu.vector_store %arg8[%c0_17, %c0_18], %21 {strides = array<i32>} : memref<16x128xf32, #tpu.memory_space<vmem>>, vector<16x128xf32>,
    return
  }
  func.func @transform_0(%arg0: i32) -> (i32, i32) {
    %c0_i32 = arith.constant 0 : i32
    %c0_i32_0 = arith.constant 0 : i32
    return %arg0, %c0_i32 : i32, i32
  }
  func.func @transform_1(%arg0: i32) -> (i32, i32) {
    %c0_i32 = arith.constant 0 : i32
    %c0_i32_0 = arith.constant 0 : i32
    %c0_i32_1 = arith.constant 0 : i32
    return %c0_i32, %c0_i32_0 : i32, i32
  }
  func.func @transform_2(%arg0: i32) -> (i32, i32) {
    %c0_i32 = arith.constant 0 : i32
    %c0_i32_0 = arith.constant 0 : i32
    %c0_i32_1 = arith.constant 0 : i32
    return %c0_i32, %c0_i32_0 : i32, i32
  }
  func.func @transform_3(%arg0: i32) -> (i32, i32) {
    %c0_i32 = arith.constant 0 : i32
    %c0_i32_0 = arith.constant 0 : i32
    %c0_i32_1 = arith.constant 0 : i32
    return %c0_i32, %c0_i32_0 : i32, i32
  }
  func.func @transform_4(%arg0: i32) -> (i32, i32) {
    %c0_i32 = arith.constant 0 : i32
    %c0_i32_0 = arith.constant 0 : i32
    %c0_i32_1 = arith.constant 0 : i32
    return %c0_i32, %c0_i32_0 : i32, i32
  }
  func.func @transform_5(%arg0: i32) -> (i32, i32) {
    %c0_i32 = arith.constant 0 : i32
    %c0_i32_0 = arith.constant 0 : i32
    %c0_i32_1 = arith.constant 0 : i32
    return %c0_i32, %c0_i32_0 : i32, i32
  }
  func.func @transform_6(%arg0: i32) -> (i32, i32) {
    %c0_i32 = arith.constant 0 : i32
    %c0_i32_0 = arith.constant 0 : i32
    %c0_i32_1 = arith.constant 0 : i32
    return %c0_i32, %c0_i32_0 : i32, i32
  }
  func.func @transform_7(%arg0: i32) -> (i32, i32) {
    %c0_i32 = arith.constant 0 : i32
    %c0_i32_0 = arith.constant 0 : i32
    return %arg0, %c0_i32 : i32, i32
  }
}

</mosaic_0001>

<bundles_post_ra>
// kernel: tpu_custom_call.1
= control target key start
LH: loop header
LB: loop body
LE: loop exit
PB: predicated region body
PF: predicated region fallthrough
CT: control target
= control target key end

     0   :  { %12 = vsyncpa [#allocation3], 0  ;;  %s802_s0 = inlined_call_operand.hbm [shape: bf16[16,16], index: 0, kind: input, shape index: {}]   ;;  %s803_s1 = inlined_call_operand.hbm [shape: bf16[16,128], index: 1, kind: input, shape index: {}]   ;;  %s804_s2 = inlined_call_operand.vmem [shape: f32[1,128], index: 2, kind: input, shape index: {}]   ;;  %s805_s3 = inlined_call_operand.hbm [shape: bf16[128,128], index: 3, kind: input, shape index: {}]   ;;  %s806_s4 = inlined_call_operand.vmem [shape: f32[1,128], index: 4, kind: input, shape index: {}]   ;;  %s807_s5 = inlined_call_operand.hbm [shape: bf16[128,128], index: 5, kind: input, shape index: {}]   ;;  %s808_s6 = inlined_call_operand.vmem [shape: f32[1,128], index: 6, kind: input, shape index: {}]   ;;  %s809_s7 = inlined_call_operand.hbm [shape: f32[16,128], index: 7, kind: output, shape index: {}]  }
   0x1   :  { %13 = vsyncpa [#allocation6], 0 }
   0x2   :  { %14 = vsyncpa [#allocation9], 0 }
   0x3   :  { %15 = vsyncpa [#allocation4], 0  ;;  %s636_s24 = smov [#allocation5]   ;;  %s637_s26 = smov [#allocation2]  }
   0x4   :  { %s33_s25 = sshll.u32 %s636_s24, 4  ;;  %s21_s27 = sshll.u32 %s637_s26, 4  ;;  %s34_s25 = int_to_ptr.vmem [resolvable:$true] %s33_s25  ;;  %s687_s27 = int_to_ptr.vmem [resolvable:$true] %s21_s27 }
   0x5   :  { %s518_s30 = scalar_lea.hbm %s803_s1, 128 }
   0x6   :  { %p519_p0 = scmp.ne.s32.totalorder %s803_s1, %s518_s30  ;;  %p522_p1 = scmp.lt.u32.totalorder %s518_s30, %s803_s1 }
   0x8   :  { %p524_p2 = pnand %p522_p1, %p519_p0 }
   0xa   :  { %527 = shalt.err (!%p524_p2)
}
   0xb   :  { %s528_s12 = scalar_lea.vmem %s34_s25, 128  ;;  %p533_p4 = scmp.lt.s32.totalorder %s34_s25, %s34_s25 }
   0xc   :  { %p529_p3 = scmp.ne.s32.totalorder %s34_s25, %s528_s12  ;;  %p534_p5 = scmp.lt.s32.totalorder %s528_s12, %s528_s12 }
   0xe   :  { %p535_p6 = por %p534_p5, %p533_p4 }
  0x10   :  { %p536_p7 = pnand %p535_p6, %p529_p3 }
  0x12   :  { %539 = shalt.err (!%p536_p7)
}
  0x13   :  { %s638_s13 = smov 64   ;;  %s639_s14 = smov 4  }
  0x14   :  { %39 = dma.hbm_to_vmem [thread:$0]  %s803_s1, 128, %s34_s25, [#allocation6], %s638_s13, %s638_s13, %s639_s14  }
  0x15   :  { %s540_s19 = scalar_lea.hbm %s802_s0, 128 }
  0x16   :  { %p541_p8 = scmp.ne.s32.totalorder %s802_s0, %s540_s19  ;;  %p544_p9 = scmp.lt.u32.totalorder %s540_s19, %s802_s0 }
  0x18   :  { %p546_p10 = pnand %p544_p9, %p541_p8 }
  0x1a   :  { %549 = shalt.err (!%p546_p10)
}
  0x1b   :  { %s550_s24 = scalar_lea.vmem %s687_s27, 128  ;;  %p555_p12 = scmp.lt.s32.totalorder %s687_s27, %s687_s27 }
  0x1c   :  { %p551_p11 = scmp.ne.s32.totalorder %s687_s27, %s550_s24  ;;  %p556_p13 = scmp.lt.s32.totalorder %s550_s24, %s550_s24 }
  0x1e   :  { %p557_p0 = por %p556_p13, %p555_p12 }
  0x20   :  { %p558_p1 = pnand %p557_p0, %p551_p11 }
  0x22   :  { %561 = shalt.err (!%p558_p1)
}
  0x23   :  { %27 = dma.hbm_to_vmem [thread:$0]  %s802_s0, 128, %s687_s27, [#allocation3], %s638_s13, %s638_s13, %s639_s14  }
  0x24   :  { %s640_s26 = smov [#allocation7]   ;;  %s641_s29 = smov [#allocation8]  }
  0x25   :  { %s47_s28 = sshll.u32 %s640_s26, 4  ;;  %s61_s30 = sshll.u32 %s641_s29, 4  ;;  %s48_s28 = int_to_ptr.vmem [resolvable:$true] %s47_s28  ;;  %s724_s30 = int_to_ptr.vmem [resolvable:$true] %s61_s30 }
  0x26   :  { %s562_s10 = scalar_lea.hbm %s805_s3, 1024 }
  0x27   :  { %p563_p2 = scmp.ne.s32.totalorder %s805_s3, %s562_s10  ;;  %p566_p3 = scmp.lt.u32.totalorder %s562_s10, %s805_s3 }
  0x29   :  { %p568_p4 = pnand %p566_p3, %p563_p2 }
  0x2b   :  { %571 = shalt.err (!%p568_p4)
}
  0x2c   :  { %s572_s0 = scalar_lea.vmem %s48_s28, 1024  ;;  %p577_p6 = scmp.lt.s32.totalorder %s48_s28, %s48_s28 }
  0x2d   :  { %p573_p5 = scmp.ne.s32.totalorder %s48_s28, %s572_s0  ;;  %p578_p7 = scmp.lt.s32.totalorder %s572_s0, %s572_s0 }
  0x2f   :  { %p579_p8 = por %p578_p7, %p577_p6 }
  0x31   :  { %p580_p9 = pnand %p579_p8, %p573_p5 }
  0x33   :  { %583 = shalt.err (!%p580_p9)
}
  0x34   :  { %53 = dma.hbm_to_vmem [thread:$0]  %s805_s3, 1024, %s48_s28, [#allocation6], %s638_s13, %s638_s13, %s639_s14  }
  0x35   :  { %s584_s20 = scalar_lea.hbm %s807_s5, 1024 }
  0x36   :  { %p585_p10 = scmp.ne.s32.totalorder %s807_s5, %s584_s20  ;;  %p588_p11 = scmp.lt.u32.totalorder %s584_s20, %s807_s5 }
  0x38   :  { %p590_p12 = pnand %p588_p11, %p585_p10 }
  0x3a   :  { %593 = shalt.err (!%p590_p12)
}
  0x3b   :  { %s594_s1 = scalar_lea.vmem %s724_s30, 1024  ;;  %p599_p0 = scmp.lt.s32.totalorder %s724_s30, %s724_s30 }
  0x3c   :  { %p595_p13 = scmp.ne.s32.totalorder %s724_s30, %s594_s1  ;;  %p600_p1 = scmp.lt.s32.totalorder %s594_s1, %s594_s1 }
  0x3e   :  { %p601_p2 = por %p600_p1, %p599_p0 }
  0x40   :  { %p602_p3 = pnand %p601_p2, %p595_p13 }
  0x42   :  { %605 = shalt.err (!%p602_p3)
}
  0x43   :  { %67 = dma.hbm_to_vmem [thread:$0]  %s807_s5, 1024, %s724_s30, [#allocation9], %s638_s13, %s638_s13, %s639_s14  }
  0x44   :  { %628 = dma.done.wait [#allocation3], 128  }
  0x45   :  { %629 = vsyncadd [#allocation3], 4294967168 }
  0x46   :  { %630 = dma.done.wait [#allocation6], 1152  }
  0x47   :  { %631 = vsyncadd [#allocation6], 4294966144 }
  0x48   :  { %632 = dma.done.wait [#allocation9], 1024  }
  0x49   :  { %633 = vsyncadd [#allocation9], 4294966272  ;;  %v642_v0 = vmov 0.0   ;;  %vm643_vm0 = vmmov 0   ;;  %v500_v1 = vld [vmem:[#allocation5] sm:$0xff]   ;;  %v501_v2 = vld [vmem:[#allocation2] sm:$0xff]  }
  0x4a   :  { %443 = vmatprep.subr.bf16.mxu0 %v642_v0  ;;  %445 = vmatprep.mubr.msk.bf16.mxu0 %vm643_vm0, %v642_v0  ;;  %vm107_vm1 = vcmask 130048   ;;  %v502_v3 = vld [vmem:[#allocation7] sm:$0xff]   ;;  %v503_v4 = vld [vmem:[#allocation7 + $0x8] sm:$0xff]   ;;  %v504_v5 = vld [vmem:[#allocation7 + $0x10] sm:$0xff]   ;;  %s644_s29 = smov [#allocation10]  }
  0x4b   :  { %449 = vmatprep.subr.bf16.mxu1 %v642_v0  ;;  %465 = vmatprep.mubr.msk.bf16.mxu1 %vm643_vm0, %v642_v0  ;;  %v505_v6 = vld [vmem:[#allocation7 + $0x18] sm:$0xff]   ;;  %v506_v7 = vld [vmem:[#allocation7 + $0x20] sm:$0xff]   ;;  %v507_v8 = vld [vmem:[#allocation7 + $0x28] sm:$0xff]   ;;  %s387_s30 = sshll.u32 %s644_s29, 4  ;;  %s388_s30 = int_to_ptr.vmem [resolvable:$true] %s387_s30 }
  0x4c   :  { %444 = vmatpush3.bf16.msra.mxu0 %v500_v1  ;;  %450 = vmatpush3.bf16.msra.mxu1 %v502_v3  ;;  %v508_v9 = vld [vmem:[#allocation7 + $0x30] sm:$0xff]   ;;  %v509_v10 = vld [vmem:[#allocation7 + $0x38] sm:$0xff]   ;;  %v510_v11 = vld [vmem:[#allocation8] sm:$0xff]   ;;  %p611_p5 = scmp.lt.s32.totalorder %s388_s30, %s388_s30 }
  0x4d   :  { %469 = vmatprep.subr.bf16.mxu0 %v642_v0  ;;  %451 = vmatprep.subr.bf16.mxu1 %v642_v0  ;;  %v511_v12 = vld [vmem:[#allocation8 + $0x8] sm:$0xff]   ;;  %v512_v13 = vld [vmem:[#allocation8 + $0x10] sm:$0xff]   ;;  %v513_v14 = vld [vmem:[#allocation8 + $0x18] sm:$0xff]  }
  0x4e   :  { %v514_v15 = vld [vmem:[#allocation8 + $0x20] sm:$0xff]   ;;  %v515_v16 = vld [vmem:[#allocation8 + $0x28] sm:$0xff]   ;;  %v401_v17 = vld [vmem:[%s804_s2] ss:$0 sm:$0xff] }
  0x4f   :  { %446 = vmatmul.mubr.msk.bf16.vlgmr.msra.gmra.mrb[0].mxu0 %vm107_vm1, %v501_v2  ;;  %v516_v27 = vld [vmem:[#allocation8 + $0x30] sm:$0xff]   ;;  %v517_v28 = vld [vmem:[#allocation8 + $0x38] sm:$0xff]  }
  0x50   :  { %485 = vmatprep.mubr.msk.bf16.mxu0 %vm643_vm0, %v642_v0  ;;  %452 = vmatpush3.bf16.msra.mxu1 %v503_v4  ;;  %v405_v29 = vld [vmem:[%s806_s4] ss:$0 sm:$0xff]  ;;  %s606_s4 = scalar_lea.vmem %s388_s30, 256 }
  0x51   :  { %453 = vmatprep.subr.bf16.mxu1 %v642_v0  ;;  %470 = vmatpush3.bf16.msra.mxu0 %v510_v11  ;;  %v414_v39 = vld [vmem:[%s808_s6] ss:$0 sm:$0xff]  ;;  %p607_p4 = scmp.ne.s32.totalorder %s388_s30, %s606_s4  ;;  %p612_p6 = scmp.lt.s32.totalorder %s606_s4, %s606_s4 }
  0x52   :  { %471 = vmatprep.subr.bf16.mxu0 %v642_v0 }
  0x53   :  { %p613_p7 = por %p612_p6, %p611_p5 }
  0x54   :  { %454 = vmatpush3.bf16.msra.mxu1 %v504_v5 }
  0x55   :  { %455 = vmatprep.subr.bf16.mxu1 %v642_v0  ;;  %472 = vmatpush3.bf16.msra.mxu0 %v511_v12  ;;  %p614_p8 = pnand %p613_p7, %p607_p4 }
  0x56   :  { %473 = vmatprep.subr.bf16.mxu0 %v642_v0 }
  0x58   :  { %456 = vmatpush3.bf16.msra.mxu1 %v505_v6 }
  0x59   :  { %457 = vmatprep.subr.bf16.mxu1 %v642_v0  ;;  %474 = vmatpush3.bf16.msra.mxu0 %v512_v13 }
  0x5a   :  { %475 = vmatprep.subr.bf16.mxu0 %v642_v0 }
  0x5c   :  { %458 = vmatpush3.bf16.msra.mxu1 %v506_v7 }
  0x5d   :  { %459 = vmatprep.subr.bf16.mxu1 %v642_v0  ;;  %476 = vmatpush3.bf16.msra.mxu0 %v513_v14 }
  0x5e   :  { %477 = vmatprep.subr.bf16.mxu0 %v642_v0 }
  0x60   :  { %460 = vmatpush3.bf16.msra.mxu1 %v507_v8 }
  0x61   :  { %461 = vmatprep.subr.bf16.mxu1 %v642_v0  ;;  %478 = vmatpush3.bf16.msra.mxu0 %v514_v15 }
  0x62   :  { %479 = vmatprep.subr.bf16.mxu0 %v642_v0 }
  0x64   :  { %462 = vmatpush3.bf16.msra.mxu1 %v508_v9 }
  0x65   :  { %463 = vmatprep.subr.bf16.mxu1 %v642_v0  ;;  %480 = vmatpush3.bf16.msra.mxu0 %v515_v16 }
  0x66   :  { %481 = vmatprep.subr.bf16.mxu0 %v642_v0 }
  0x68   :  { %464 = vmatpush3.bf16.msra.mxu1 %v509_v10 }
  0x69   :  { %482 = vmatpush3.bf16.msra.mxu0 %v516_v27 }
  0x6a   :  { %483 = vmatprep.subr.bf16.mxu0 %v642_v0 }
  0x6d   :  { %484 = vmatpush3.bf16.msra.mxu0 %v517_v28 }
 0x122   :  { %v145_v18 = vpop.f32.mrb[0].mxu0 }
 0x123   :  { %v146_v19 = vadd.f32 %v401_v17, %v145_v18  ;;  %v447_v20 = vpop.f32.mrb[1].mxu0 }
 0x124   :  { %v148_v21 = vpop.f32.mrb[2].mxu0 }
 0x125   :  { %v149_v22 = vadd.f32 %v401_v17, %v148_v21  ;;  %v448_v23 = vpop.f32.mrb[3].mxu0  ;;  %v152_v24 = vmax.f32 %v146_v19, 0.0 }
 0x127   :  { %v153_v25 = vmax.f32 %v149_v22, 0.0 }
 0x129   :  { %v154_v26 = vpack.c.bf16 %v153_v25, %v152_v24 }
 0x12b   :  { %466 = vmatmul.mubr.bf16.vlgmr.msra.gmra.mrb[0].mxu1 %v154_v26 }
 0x1fe   :  { %v259_v30 = vpop.f32.mrb[0].mxu1 }
 0x1ff   :  { %v260_v31 = vadd.f32 %v405_v29, %v259_v30  ;;  %v467_v32 = vpop.f32.mrb[1].mxu1 }
 0x200   :  { %v262_v33 = vpop.f32.mrb[2].mxu1 }
 0x201   :  { %v263_v34 = vadd.f32 %v405_v29, %v262_v33  ;;  %v468_v35 = vpop.f32.mrb[3].mxu1  ;;  %v266_v36 = vmax.f32 %v260_v31, 0.0 }
 0x203   :  { %v267_v37 = vmax.f32 %v263_v34, 0.0 }
 0x205   :  { %v268_v38 = vpack.c.bf16 %v267_v37, %v266_v36 }
 0x207   :  { %486 = vmatmul.mubr.bf16.vlgmr.msra.gmra.mrb[4].mxu0 %v268_v38 }
 0x2da   :  { %v373_v40 = vpop.f32.mrb[4].mxu0 }
 0x2db   :  { %v374_v41 = vadd.f32 %v414_v39, %v373_v40  ;;  %v487_v42 = vpop.f32.mrb[5].mxu0 }
 0x2dc   :  { %v376_v43 = vpop.f32.mrb[6].mxu0 }
 0x2dd   :  { %380 = vst [vmem:[#allocation10] sm:$0xff] %v374_v41  ;;  %v377_v44 = vadd.f32 %v414_v39, %v376_v43  ;;  %v488_v45 = vpop.f32.mrb[7].mxu0 }
 0x2df   :  { %381 = vst [vmem:[#allocation10 + $0x8] sm:$0xff] %v377_v44 }
 0x2e0   :  { %617 = shalt.err (!%p614_p8)
}
 0x2e1   :  { %s618_s9 = scalar_lea.hbm %s809_s7, 256 }
 0x2e2   :  { %p619_p9 = scmp.ne.s32.totalorder %s809_s7, %s618_s9  ;;  %p622_p10 = scmp.lt.u32.totalorder %s618_s9, %s809_s7 }
 0x2e4   :  { %p624_p11 = pnand %p622_p10, %p619_p9 }
 0x2e6   :  { %627 = shalt.err (!%p624_p11)
}
 0x2e7   :  { %s645_s16 = smov 128   ;;  %s646_s0 = smov 8  }
 0x2e8   :  { %393 = dma.vmem_to_hbm [thread:$0]  %s388_s30, 256, %s809_s7, [#allocation4], %s645_s16, %s645_s16, %s646_s0  }
 0x2e9   :  { %634 = dma.done.wait [#allocation4], 256  }
 0x2ea   :  { %635 = vsyncadd [#allocation4], 4294967040 }
 0x2eb   :  { %397 = vsyncpa [#allocation3], 1 }
 0x2ec   :  { %398 = vsyncpa [#allocation6], 1 }
 0x2ed   :  { %399 = vsyncpa [#allocation9], 1 }
 0x2ee   :  { %400 = vsyncpa [#allocation4], 1 }

</bundles_post_ra>
